<compile_context>
chip_gen: v6e
topology: v6e:2x2x1
jax: 0.10.0
libtpu: 0.0.40
codegen_flags: <defaults>
</compile_context>

<pallas_src>
import jax
import jax.numpy as jnp
from jax import lax
from jax.experimental import pallas as pl
from jax.experimental.pallas import tpu as pltpu


def _round_up(x, m):
    return ((x + m - 1) // m) * m


# ----------------------------------------------------------------------------
# Pallas kernel: fused (strided encoder Conv1d) + (1x1 conv + residual)
#   y = (I + W_pre) @ (W_enc * x)   folded into a single matmul
# ----------------------------------------------------------------------------
def _fused_conv_kernel(x_ref, w_ref, o_ref):
    """x_ref: (K_dim, Nb) bf16   pre-shifted, stride-blocked input columns
       w_ref: (C_out_pad, K_dim) bf16   merged weight (constant, resident)
       o_ref: (C_out_pad, Nb) bf16      lane-dense output (time*batch on lanes)
    """
    o_ref[...] = jnp.dot(
        w_ref[...], x_ref[...],
        preferred_element_type=jnp.float32).astype(o_ref.dtype)


def fused_encoder_precond(x_cols, w_merged):
    """x_cols: (K_dim, B*T_out) bf16 ; w_merged: (C_out_pad, K_dim) bf16."""
    k_dim, total_n = x_cols.shape
    c_out_pad, _ = w_merged.shape

    # Split the lane axis into two "parallel" blocks when it stays 128-aligned
    # so v7x's two TensorCores each take half; otherwise a single full block
    # (optimal for the single-TC v5e/v6e chips).
    if total_n >= 512 and total_n % 256 == 0:
        n_blocks = 2
    else:
        n_blocks = 1
    block_n = total_n // n_blocks

    cost = pl.CostEstimate(
        flops=2 * c_out_pad * k_dim * total_n,
        transcendentals=0,
        bytes_accessed=2 * (k_dim * total_n + c_out_pad * k_dim
                            + c_out_pad * total_n))

    return pl.pallas_call(
        _fused_conv_kernel,
        out_shape=jax.ShapeDtypeStruct((c_out_pad, total_n), jnp.bfloat16),
        grid_spec=pltpu.PrefetchScalarGridSpec(
            num_scalar_prefetch=0,
            grid=(n_blocks,),
            in_specs=[
                pl.BlockSpec((k_dim, block_n), lambda i: (0, i)),
                # ~1 KB constant weight: constant index_map -> fetched once.
                pl.BlockSpec((c_out_pad, k_dim), lambda i: (0, 0)),
            ],
            out_specs=pl.BlockSpec((c_out_pad, block_n), lambda i: (0, i)),
        ),
        compiler_params=pltpu.CompilerParams(
            dimension_semantics=("parallel",)),
        cost_estimate=cost,
    )(x_cols, w_merged)


# ----------------------------------------------------------------------------
# Glue (plain JAX): prepare_audio
# ----------------------------------------------------------------------------
def prepare_audio(x, in_sr, target_sr, target_length, target_channels):
    # TODO(synk): torchaudio-style resampling for in_sr != target_sr not
    # implemented (no-op here because the module calls it with in_sr == model_sr).
    T = x.shape[-1]
    if T >= target_length:
        x = x[..., :target_length]
    else:
        x = jnp.pad(x, ((0, 0), (0, 0), (0, target_length - T)))
    c = x.shape[1]
    if target_channels == 1:
        x = jnp.mean(x, axis=1, keepdims=True)
    elif target_channels == 2:
        if c == 1:
            x = jnp.repeat(x, 2, axis=1)
        elif c > 2:
            x = x[:, :2, :]
    return x


# ----------------------------------------------------------------------------
# Module
# ----------------------------------------------------------------------------
class PrepareConditionedAudio:
    """JAX/Pallas port of stable_audio_tools.csa.csa.prepare_conditioned_audio.

    # TODO(synk): the real encoder is built from an arbitrary config
    # (create_encoder_from_config, e.g. Oobleck) — synthesized here as a single
    # strided Conv1d (io_channels -> io_channels*2, downsample by enc_stride).
    """

    def __init__(self, io_channels=2, model_sample_rate=16000, sample_size=2048,
                 enc_stride=8, enc_kernel=16, key=None):
        assert enc_kernel % enc_stride == 0, "kernel must be a multiple of stride"
        self.io_channels = io_channels
        self.model_sample_rate = model_sample_rate
        self.sample_size = sample_size
        self.enc_stride = enc_stride
        self.enc_kernel = enc_kernel
        self.enc_pad = (enc_kernel - enc_stride) // 2

        if key is None:
            key = jax.random.PRNGKey(0)
        k_enc, k_pre = jax.random.split(key)

        c_in = io_channels
        c_out = io_channels * 2
        # Synthetic encoder conv weight (C_out, C_in, K), bias=False.
        self.w_enc = (jax.random.normal(k_enc, (c_out, c_in, enc_kernel),
                                        dtype=jnp.float32)
                      * (1.0 / jnp.sqrt(c_in * enc_kernel)))
        # preprocess_conv = nn.Conv1d(2*io, 2*io, 1, bias=False): (C_out, C_out, 1)
        self.w_pre = (jax.random.normal(k_pre, (c_out, c_out, 1), dtype=jnp.float32)
                      * (1.0 / jnp.sqrt(c_out)))

        # --- fuse the 1x1 conv + residual into the encoder weight ------------
        #   y = z + W_pre @ z = (I + W_pre) @ z  =>  W_comb = (I + W_pre) @ W_enc
        m_res = jnp.eye(c_out, dtype=jnp.float32) + self.w_pre[:, :, 0]
        w_comb = jnp.einsum('oi,ick->ock', m_res, self.w_enc)   # (c_out, c_in, K)

        # Merge the J = K//S stride-taps into one contraction axis so the
        # kernel is a single (C_out_pad, J*C_in*S) @ (J*C_in*S, N) matmul.
        j_taps = enc_kernel // enc_stride
        c_out_pad = _round_up(c_out, 16)                 # full bf16 sublane tile
        k_dim = j_taps * c_in * enc_stride
        w_m = w_comb.reshape(c_out, c_in, j_taps, enc_stride)     # k = j*S + s
        w_m = w_m.transpose(0, 2, 1, 3).reshape(c_out, k_dim)     # [o, j*C*S+c*S+s]
        w_m = jnp.pad(w_m, ((0, c_out_pad - c_out), (0, 0)))
        self._w_merged = w_m.astype(jnp.bfloat16)

        self._c_out = c_out
        self._c_out_pad = c_out_pad
        self._j_taps = j_taps
        self._k_dim = k_dim

        # jit the whole forward so the pad/reshape/shift/cast prologue and the
        # un-fold/slice/transpose epilogue fuse into as few HLOs as possible.
        self._jitted_forward = jax.jit(self._forward)

    # Stride-blocked + pre-shifted, lane-dense input prep (all lane-aligned).
    def _prepare_kernel_input(self, xp):
        B, C, T = xp.shape
        S, pad, J = self.enc_stride, self.enc_pad, self._j_taps
        t_padded = T + 2 * pad
        assert t_padded % S == 0, "padded length must be a multiple of enc_stride"
        tb = t_padded // S
        t_out = tb - (J - 1)
        xpad = jnp.pad(xp, ((0, 0), (0, 0), (pad, pad)))
        # (B, C, Tb, S) -> (B, C, S, Tb) -> (B, C*S, Tb): stride-block, time on lanes.
        xb = xpad.reshape(B, C, tb, S).transpose(0, 1, 3, 2).reshape(B, C * S, tb)
        # Pre-expand the J shifted windows in the wrapper (only ~2x of a tiny
        # tile) so the kernel sees full, lane-aligned operands.
        xs = jnp.stack([xb[:, :, j:j + t_out] for j in range(J)], axis=1)
        xs = xs.reshape(B, J * C * S, t_out)
        # Fold batch onto the lane axis: (K_dim, B*T_out), column = b*T_out + t.
        xk = xs.transpose(1, 0, 2).reshape(J * C * S, B * t_out)
        return xk.astype(jnp.bfloat16), t_out

    def _forward(self, x):
        xp = prepare_audio(x, self.model_sample_rate, self.model_sample_rate,
                           target_length=self.sample_size,
                           target_channels=self.io_channels)
        B = xp.shape[0]
        xk, t_out = self._prepare_kernel_input(xp)
        out = fused_encoder_precond(xk, self._w_merged)   # (c_out_pad, B*T_out) bf16
        out = out.reshape(self._c_out_pad, B, t_out)
        out = jnp.transpose(out, (1, 2, 0))[:, :, :self._c_out]   # 'b c t -> b t c'
        return out                                                # bf16

    def __call__(self, x):
        return self._jitted_forward(x)

    # --- references ----------------------------------------------------------
    def reference(self, x):
        """Pure-JAX f32 reference of the original (unfused) module formulation."""
        xp = prepare_audio(x, self.model_sample_rate, self.model_sample_rate,
                           target_length=self.sample_size,
                           target_channels=self.io_channels)
        z = lax.conv_general_dilated(
            xp, self.w_enc, window_strides=(self.enc_stride,),
            padding=[(self.enc_pad, self.enc_pad)],
            dimension_numbers=('NCH', 'OIH', 'NCH'))
        y = lax.conv_general_dilated(
            z, self.w_pre, window_strides=(1,), padding=[(0, 0)],
            dimension_numbers=('NCH', 'OIH', 'NCH')) + z
        return jnp.transpose(y, (0, 2, 1))

    def reference_bf16(self, x):
        """Pure-JAX reference using the exact same bf16 operands as the kernel."""
        xp = prepare_audio(x, self.model_sample_rate, self.model_sample_rate,
                           target_length=self.sample_size,
                           target_channels=self.io_channels)
        B = xp.shape[0]
        xk, t_out = self._prepare_kernel_input(xp)
        y = jnp.dot(self._w_merged.astype(jnp.float32), xk.astype(jnp.float32))
        y = y.reshape(self._c_out_pad, B, t_out)
        return jnp.transpose(y, (1, 2, 0))[:, :, :self._c_out]


# ----------------------------------------------------------------------------
if __name__ == "__main__":
    key = jax.random.PRNGKey(0)
    k_x, k_params = jax.random.split(key)

    # Small shapes: mono audio that gets channel-duplicated and zero-padded.
    B, in_ch, T_in = 2, 1, 1500
    x = jax.random.normal(k_x, (B, in_ch, T_in), dtype=jnp.float32)

    mod = PrepareConditionedAudio(io_channels=2, model_sample_rate=16000,
                                  sample_size=2048, enc_stride=8,
                                  enc_kernel=16, key=k_params)

    out = jax.block_until_ready(mod(x))

    # shape check: (b, t, c) with t = sample_size / stride, c = io_channels*2
    assert out.shape == (B, mod.sample_size // mod.enc_stride,
                         mod.io_channels * 2), out.shape

    # Tight check vs a reference using identical bf16 operands (same math;
    # slack covers the kernel's bf16 output store rounding).
    ref_q = mod.reference_bf16(x)
    assert jnp.allclose(out.astype(jnp.float32), ref_q, atol=5e-2, rtol=1e-2), \
        float(jnp.max(jnp.abs(out.astype(jnp.float32) - ref_q)))

    # Loose check vs the full-precision original (unfused) formulation.
    ref = mod.reference(x)
    assert jnp.allclose(out.astype(jnp.float32), ref, atol=1.5e-1, rtol=1e-1), \
        float(jnp.max(jnp.abs(out.astype(jnp.float32) - ref)))

    print("KERNEL_OK")
</pallas_src>

<mosaic_0001>
module attributes {stable_mosaic.version = 11 : i64} {
  func.func @_fused_conv_kernel(%arg0: i32, %arg1: memref<32x256xbf16, #tpu.memory_space<vmem>>, %arg2: memref<16x32xbf16, #tpu.memory_space<vmem>>, %arg3: memref<16x256xbf16, #tpu.memory_space<vmem>>) attributes {dimension_semantics = [#tpu.dimension_semantics<parallel>], iteration_bounds = array<i64: 2>, scalar_prefetch = 0 : i64, scratch_operands = 0 : i64, tpu.core_type = #tpu.core_type<tc>, window_params = [{transform_indices = @transform_0, window_bounds = array<i64: 32, 256>}, {pipeline_mode = #tpu.pipeline_mode<synchronous>, transform_indices = @transform_1, window_bounds = array<i64: 16, 32>}, {transform_indices = @transform_2, window_bounds = array<i64: 16, 256>}]} {
    %c0 = arith.constant 0 : index
    %c0_0 = arith.constant 0 : index
    %0 = vector.load %arg2[%c0, %c0_0] : memref<16x32xbf16, #tpu.memory_space<vmem>>, vector<16x32xbf16>
    %c0_1 = arith.constant 0 : index
    %c0_2 = arith.constant 0 : index
    %1 = vector.load %arg1[%c0_1, %c0_2] : memref<32x256xbf16, #tpu.memory_space<vmem>>, vector<32x256xbf16>
    %cst = arith.constant dense<0.000000e+00> : vector<16x256xf32>
    %2 = tpu.matmul %0, %1, %cst {dimension_numbers = #tpu.dot_dimension_numbers<[1], [0], [0], [1], [0, 0, 1, 1], [], []>} : vector<16x32xbf16>, vector<32x256xbf16>, vector<16x256xf32> -> vector<16x256xf32>
    %3 = arith.truncf %2 : vector<16x256xf32> to vector<16x256xbf16>
    %c0_3 = arith.constant 0 : index
    %c0_4 = arith.constant 0 : index
    %4 = vector.load %arg3[%c0_3, %c0_4] : memref<16x256xbf16, #tpu.memory_space<vmem>>, vector<16x256xbf16>
    tpu.vector_store %arg3[%c0_3, %c0_4], %3 {strides = array<i32>} : memref<16x256xbf16, #tpu.memory_space<vmem>>, vector<16x256xbf16>,
    return
  }
  func.func @transform_0(%arg0: i32) -> (i32, i32) {
    %c0_i32 = arith.constant 0 : i32
    %c0_i32_0 = arith.constant 0 : i32
    return %c0_i32, %arg0 : i32, i32
  }
  func.func @transform_1(%arg0: i32) -> (i32, i32) {
    %c0_i32 = arith.constant 0 : i32
    %c0_i32_0 = arith.constant 0 : i32
    %c0_i32_1 = arith.constant 0 : i32
    return %c0_i32, %c0_i32_0 : i32, i32
  }
  func.func @transform_2(%arg0: i32) -> (i32, i32) {
    %c0_i32 = arith.constant 0 : i32
    %c0_i32_0 = arith.constant 0 : i32
    return %c0_i32, %arg0 : i32, i32
  }
}

</mosaic_0001>

<bundles_post_ra>
// kernel: _forward.1
= control target key start
LH: loop header
LB: loop body
LE: loop exit
PB: predicated region body
PF: predicated region fallthrough
CT: control target
= control target key end

     0   :  { %s483_s9 = smov 0   ;;  %s485_s10 = smov 0   ;;  %s546_s0 = inlined_call_operand.vmem [shape: bf16[32,512], index: 0, kind: input, shape index: {}]   ;;  %s547_s1 = inlined_call_operand.vmem [shape: bf16[16,32], index: 1, kind: input, shape index: {}]   ;;  %s548_s2 = inlined_call_operand.vmem [shape: bf16[16,512], index: 2, kind: output, shape index: {}]  }
   0x1   :  { %s487_s11 = smov 0  }
   0x2 LB: > { %s384_s12 = sadd.s32 4294967295, %s465_s11   ;;  %s500_s13 = sadd.s32 1, %s465_s11   ;;  %s465_s11 = sphi %s487_s11, %s552_s11   ;;  %s461_s10 = sphi %s485_s10, %s551_s10   ;;  %s457_s9 = sphi %s483_s9, %s550_s9  }
   0x3   : > { %s16_s14 = ssub.s32 %s465_s11, %s500_s13  ;;  %s19_s15 = sadd.s32 1, %s461_s10 }
   0x4   : > { %p17_p0 = scmp.eq.s32.totalorder %s16_s14, 0  ;;  %p26_p1 = scmp.ne.s32.totalorder %s461_s10, %s457_s9 }
   0x5   : > { %p27_p2 = scmp.eq.s32.totalorder %s465_s11, 0  ;;  %p77_p3 = scmp.eq.s32.totalorder %s384_s12, 1 }
   0x6   : > { %s511_s16 = scalar_select %p17_p0, %s461_s10, %s19_s15  }
   0x7   : > { %p28_p4 = por %p27_p2, %p26_p1  ;;  %p513_p5 = por %p77_p3, %p26_p1 }
   0x8   : > { %p387_p6 = scmp.ge.s32.totalorder %s465_s11, 2 }
   0xa   : > { %102 = sbr.rel (%p387_p6) target bundleno = 21 (0x15), region = 20 }
   0xf   : > { %105 = sbr.rel (!%p28_p4) target bundleno = 21 (0x15), region = 24  ;;  %s107_s18 = sand.u32 (%p28_p4), 1, %s461_s10  }
  0x10   : > { %s407_s19 = sshll.u32 (%p28_p4), %s465_s11, 3  ;;  %s388_s20 = sshll.u32 (%p28_p4), %s107_s18, 5 }
  0x11   : > { %s112_s23 = scalar_lea.vmem (%p28_p4), %s546_s0, %s407_s19  ;;  %s109_s24 = scalar_lea.vmem (%p28_p4), [#allocation2], %s388_s20 }
  0x12   : > { %v147_v0 = vld [vmem:[%s112_s23] sm:$0xff] (%p28_p4)  ;;  %v149_v1 = vld [vmem:[%s112_s23 + $0x10] sm:$0xff] (%p28_p4) }
  0x13   : > { %v151_v2 = vld [vmem:[%s112_s23 + $0x20] sm:$0xff] (%p28_p4)  ;;  %148 = vst [vmem:[%s109_s24] sm:$0xff] (%p28_p4), %v147_v0  ;;  %150 = vst [vmem:[%s109_s24 + $0x8] sm:$0xff] (%p28_p4), %v149_v1  ;;  %v153_v3 = vld [vmem:[%s112_s23 + $0x30] sm:$0xff] (%p28_p4) }
  0x14   : > { %152 = vst [vmem:[%s109_s24 + $0x10] sm:$0xff] %v151_v2  ;;  %154 = vst [vmem:[%s109_s24 + $0x18] sm:$0xff] %v153_v3 }
  0x15 PF: > { %p391_p7 = scmp.ge.s32.totalorder %s465_s11, 1  ;;  %p159_p8 = scmp.lt.s32.totalorder %s465_s11, 3 }
  0x17   : > { %p160_p9 = pnand %p391_p7, %p159_p8 }
  0x18   : > { %s166_s25 = sand.u32 (!%p160_p9), 1, %s457_s9  }
  0x19   : > { %163 = sbr.rel (%p160_p9) target bundleno = 249 (0xf9), region = 62  ;;  %s392_s26 = sshll.u32 (!%p160_p9), %s166_s25, 5 }
  0x1a   : > { %s168_s27 = scalar_lea.vmem (!%p160_p9), [#allocation2], %s392_s26  ;;  %s393_s30 = sshll.u32 (!%p160_p9), %s166_s25, 4 }
  0x1b   : > { %s185_s3 = scalar_lea.vmem (!%p160_p9), [#allocation3], %s393_s30 }
  0x1e   : > { %v467_v4 = vmov 0   ;;  %v436_v5 = vld [vmem:[%s168_s27 + $0x14] ss:$8 sps:$4 sm:$0xff]   ;;  %v438_v6 = vld [vmem:[%s168_s27 + $0x10] ss:$8 sps:$4 sm:$0xff]   ;;  %v442_v9 = vld [vmem:[%s547_s1] sm:$0xff]  }
  0x1f   : > { %256 = vmatprep.mubr.bf16.mxu0 %v467_v4  ;;  %236 = vmatprep.subr.bf16.mxu0 %v436_v5  ;;  %v439_v7 = vld [vmem:[%s168_s27 + $0x4] ss:$8 sps:$4 sm:$0xff]   ;;  %v441_v8 = vld [vmem:[%s168_s27] ss:$8 sps:$4 sm:$0xff]   ;;  %vm220_vm0 = vcmask 261120   ;;  %s410_s4 = sshll.u32 (%p513_p5), %s384_s12, 3 }
  0x20   : > { %237 = vmatpush1.bf16.msra.mxu0 %v438_v6  ;;  %s290_s7 = scalar_lea.vmem (%p513_p5), %s548_s2, %s410_s4 }
  0x21   : > { %238 = vmatprep.subr.bf16.mxu0 %v439_v7 }
  0x24   : > { %239 = vmatpush1.bf16.msra.mxu0 %v441_v8 }
  0x27   : > { %399 = vmatmul.mubr.msk.bf16.vlgmr.msra.gmra.mxu0 %vm220_vm0, %v442_v9 }
  0xe7   : > { %v258_v10 = vpop.f32.mrf.mxu0 }
  0xe9   : > { %v260_v11 = vpop.f32.mrf.mxu0 }
  0xea   : > { %v408_v12 = vpack.c.bf16 %v260_v11, %v258_v10 }
  0xeb   : > { %v262_v13 = vpop.f32.mrf.mxu0 }
  0xec   : > { %279 = vst [vmem:[%s185_s3] sm:$0xff] %v408_v12  ;;  %287 = sbr.rel (!%p513_p5) target bundleno = 249 (0xf9), region = 70 }
  0xed   : > { %v264_v14 = vpop.f32.mrf.mxu0 }
  0xee   : > { %v409_v15 = vpack.c.bf16 %v264_v14, %v262_v13 }
  0xf0   : > { %280 = vst [vmem:[%s185_s3 + $0x8] sm:$0xff] %v409_v15 }
  0xf3   : > { %v321_v16 = vld [vmem:[%s185_s3] sm:$0xff] }
  0xf4   : > { %322 = vst [vmem:[%s290_s7] sm:$0xff] %v321_v16 }
  0xf7   : > { %v323_v17 = vld [vmem:[%s185_s3 + $0x8] sm:$0xff] }
  0xf8   : > { %324 = vst [vmem:[%s290_s7 + $0x10] sm:$0xff] %v323_v17 }
  0xf9 PF: > { %p9_p10 = scmp.ge.s32.totalorder %s500_s13, 4   ;;  %s550_s9 = smov %s461_s10 }
  0xfa   : > { %s551_s10 = smov %s511_s16  ;;  %s552_s11 = smov %s500_s13 }
  0xfb   :  { %11 = sbr.rel (!%p9_p10) target bundleno = 2 (0x2), region = 139 }

</bundles_post_ra>
